<compile_context>
chip_gen: v5e
topology: v5e:2x2
jax: 0.10.0
libtpu: 0.0.40
codegen_flags: <defaults>
</compile_context>

<pallas_src>
import jax
import jax.numpy as jnp
from jax.experimental import pallas as pl
from jax.experimental.pallas import tpu as pltpu


# ------------------------------ kernel -------------------------------------

def _ln(x, g, b, eps=1e-5):
    # nn.LayerNorm over the last axis: biased variance, default eps=1e-5.
    mu = jnp.mean(x, axis=-1, keepdims=True)
    var = jnp.mean((x - mu) ** 2, axis=-1, keepdims=True)
    return (x - mu) * jax.lax.rsqrt(var + eps) * g + b


def embed_kernel(p_ref, cls_ref, pos_ref, g1_ref, b1_ref, w_ref, bias_ref,
                 g2_ref, b2_ref, o_ref):
    """Fused patch-embed: LN -> Linear -> LN -> [cls | tokens] + pos.

    p_ref  : (TB, NP, PD)   patch block for TB batch items
    cls_ref: (1, 1, D)      cls token
    pos_ref: (1, NP+1, D)   positional embedding
    o_ref  : (TB, NP+1, D)
    """
    TB, NP, PD = p_ref.shape
    D = w_ref.shape[1]

    # Flatten (TB, NP) rows so the single MXU matmul sees M = TB*NP rows.
    p = p_ref[...].reshape(TB * NP, PD)
    pn = _ln(p, g1_ref[...], b1_ref[...])
    y = jnp.dot(pn, w_ref[...], preferred_element_type=jnp.float32) + bias_ref[...]
    y = _ln(y, g2_ref[...], b2_ref[...]).reshape(TB, NP, D)

    # Epilogue fused into the same kernel: cls token row + pos embedding,
    # written with slice stores (no in-kernel concatenate).
    cls_row = cls_ref[...] + pos_ref[:, 0:1, :]                       # (1, 1, D)
    o_ref[:, 0:1, :] = jnp.broadcast_to(cls_row, (TB, 1, D)).astype(o_ref.dtype)
    o_ref[:, 1:, :] = (y + pos_ref[:, 1:, :]).astype(o_ref.dtype)
    # Dropout(p=0.0) is an identity -> nothing to do.


# ------------------------------ wrapper -------------------------------------

def _fixed_map(ndim):
    return lambda b: (0,) * ndim


def _pick_tb(batch, num_patches, target_rows=256):
    """Smallest divisor of `batch` whose row count fills the MXU (>=target)."""
    tb = batch
    for cand in range(1, batch + 1):
        if batch % cand == 0 and cand * num_patches >= target_rows:
            tb = cand
            break
    return tb


def image_embedder_forward(img, params, *, patch_size):
    B, C, H, W = img.shape
    ph = pw = patch_size
    nh, nw = H // ph, W // pw
    NP = nh * nw
    PD = C * ph * pw
    D = params["w"].shape[1]

    # einops: 'b c (h p1) (w p2) -> b (h w) (p1 p2 c)'   (plain-JAX layout glue)
    x = img.reshape(B, C, nh, ph, nw, pw)
    x = x.transpose(0, 2, 4, 3, 5, 1).reshape(B, NP, PD)

    TB = _pick_tb(B, NP)

    weights = [params["g1"], params["b1"], params["w"], params["bias"],
               params["g2"], params["b2"]]
    weight_specs = [pl.BlockSpec(w.shape, _fixed_map(w.ndim)) for w in weights]

    return pl.pallas_call(
        embed_kernel,
        out_shape=jax.ShapeDtypeStruct((B, NP + 1, D), img.dtype),
        grid=(B // TB,),
        in_specs=[
            pl.BlockSpec((TB, NP, PD), lambda b: (b, 0, 0)),          # patches
            pl.BlockSpec((1, 1, D), lambda b: (0, 0, 0)),             # cls token
            pl.BlockSpec((1, NP + 1, D), lambda b: (0, 0, 0)),        # pos embed
        ] + weight_specs,
        out_specs=pl.BlockSpec((TB, NP + 1, D), lambda b: (b, 0, 0)),
        compiler_params=pltpu.CompilerParams(
            dimension_semantics=("parallel",)),                       # v7x: 2 TCs
    )(x, params["cls_token"], params["pos_embedding"], *weights)


# --------------------------- parameter init ---------------------------------

def init_params(key, *, patch_dim, dim, num_patches):
    kw, kb, kpos, kcls = jax.random.split(key, 4)
    return {
        "g1": jnp.ones((1, patch_dim), jnp.float32),
        "b1": jnp.zeros((1, patch_dim), jnp.float32),
        # Linear stored as (in, out): x @ W + b  ==  torch x @ W_t.T + b.
        "w": jax.random.normal(kw, (patch_dim, dim), jnp.float32) * 0.02,
        "bias": jax.random.normal(kb, (1, dim), jnp.float32) * 0.02,
        "g2": jnp.ones((1, dim), jnp.float32),
        "b2": jnp.zeros((1, dim), jnp.float32),
        "pos_embedding": jax.random.normal(kpos, (1, num_patches + 1, dim),
                                           jnp.float32),
        "cls_token": jax.random.normal(kcls, (1, 1, dim), jnp.float32),
    }


# ------------------------------ reference -----------------------------------

def reference_forward(img, params, *, patch_size):
    B, C, H, W = img.shape
    ph = pw = patch_size
    nh, nw = H // ph, W // pw
    x = img.reshape(B, C, nh, ph, nw, pw)
    x = x.transpose(0, 2, 4, 3, 5, 1).reshape(B, nh * nw, C * ph * pw)
    x = _ln(x, params["g1"], params["b1"])
    x = jnp.einsum("bnp,pd->bnd", x, params["w"]) + params["bias"]
    x = _ln(x, params["g2"], params["b2"])
    cls = jnp.broadcast_to(params["cls_token"], (B, 1, x.shape[-1]))
    x = jnp.concatenate([cls, x], axis=1)
    return x + params["pos_embedding"][:, : x.shape[1]]


# --------------------------------- main --------------------------------------

if __name__ == "__main__":
    # Module-implied small shapes: image 16x16 RGB, patch 4 -> 16 patches,
    # patch_dim = 3*4*4 = 48, dim = 32, batch = 2.
    B, C, IMG, PATCH, DIM = 2, 3, 16, 4, 32
    NP = (IMG // PATCH) ** 2
    PD = C * PATCH * PATCH

    key = jax.random.PRNGKey(0)
    k_img, k_par = jax.random.split(key)
    img = jax.random.normal(k_img, (B, C, IMG, IMG), jnp.float32)
    params = init_params(k_par, patch_dim=PD, dim=DIM, num_patches=NP)

    out = image_embedder_forward(img, params, patch_size=PATCH)
    out = jax.block_until_ready(out)
    assert out.shape == (B, NP + 1, DIM), out.shape

    ref = jax.block_until_ready(reference_forward(img, params, patch_size=PATCH))
    assert bool(jnp.allclose(out, ref, atol=1e-3, rtol=1e-3)), "mismatch vs reference"

    print("KERNEL_OK")
</pallas_src>

<mosaic_0001>
module attributes {stable_mosaic.version = 11 : i64} {
  func.func @embed_kernel(%arg0: i32, %arg1: memref<2x16x48xf32, #tpu.memory_space<vmem>>, %arg2: memref<1x1x32xf32, #tpu.memory_space<vmem>>, %arg3: memref<1x17x32xf32, #tpu.memory_space<vmem>>, %arg4: memref<1x48xf32, #tpu.memory_space<vmem>>, %arg5: memref<1x48xf32, #tpu.memory_space<vmem>>, %arg6: memref<48x32xf32, #tpu.memory_space<vmem>>, %arg7: memref<1x32xf32, #tpu.memory_space<vmem>>, %arg8: memref<1x32xf32, #tpu.memory_space<vmem>>, %arg9: memref<1x32xf32, #tpu.memory_space<vmem>>, %arg10: memref<2x17x32xf32, #tpu.memory_space<vmem>>) attributes {dimension_semantics = [#tpu.dimension_semantics<parallel>], iteration_bounds = array<i64: 1>, scalar_prefetch = 0 : i64, scratch_operands = 0 : i64, tpu.core_type = #tpu.core_type<tc>, window_params = [{transform_indices = @transform_0, window_bounds = array<i64: 2, 16, 48>}, {pipeline_mode = #tpu.pipeline_mode<synchronous>, transform_indices = @transform_1, window_bounds = array<i64: 1, 1, 32>}, {pipeline_mode = #tpu.pipeline_mode<synchronous>, transform_indices = @transform_2, window_bounds = array<i64: 1, 17, 32>}, {pipeline_mode = #tpu.pipeline_mode<synchronous>, transform_indices = @transform_3, window_bounds = array<i64: 1, 48>}, {pipeline_mode = #tpu.pipeline_mode<synchronous>, transform_indices = @transform_4, window_bounds = array<i64: 1, 48>}, {pipeline_mode = #tpu.pipeline_mode<synchronous>, transform_indices = @transform_5, window_bounds = array<i64: 48, 32>}, {pipeline_mode = #tpu.pipeline_mode<synchronous>, transform_indices = @transform_6, window_bounds = array<i64: 1, 32>}, {pipeline_mode = #tpu.pipeline_mode<synchronous>, transform_indices = @transform_7, window_bounds = array<i64: 1, 32>}, {pipeline_mode = #tpu.pipeline_mode<synchronous>, transform_indices = @transform_8, window_bounds = array<i64: 1, 32>}, {transform_indices = @transform_9, window_bounds = array<i64: 2, 17, 32>}]} {
    %c0 = arith.constant 0 : index
    %c0_0 = arith.constant 0 : index
    %c0_1 = arith.constant 0 : index
    %0 = vector.load %arg1[%c0, %c0_0, %c0_1] : memref<2x16x48xf32, #tpu.memory_space<vmem>>, vector<2x16x48xf32>
    %1 = vector.shape_cast %0 : vector<2x16x48xf32> to vector<32x48xf32>
    %c0_2 = arith.constant 0 : index
    %c0_3 = arith.constant 0 : index
    %2 = vector.load %arg4[%c0_2, %c0_3] : memref<1x48xf32, #tpu.memory_space<vmem>>, vector<1x48xf32>
    %c0_4 = arith.constant 0 : index
    %c0_5 = arith.constant 0 : index
    %3 = vector.load %arg5[%c0_4, %c0_5] : memref<1x48xf32, #tpu.memory_space<vmem>>, vector<1x48xf32>
    %cst = arith.constant dense<0.000000e+00> : vector<32xf32>
    %4 = vector.multi_reduction <add>, %1, %cst [1] : vector<32x48xf32> to vector<32xf32>
    %5 = vector.shape_cast %4 : vector<32xf32> to vector<32x1xf32>
    %cst_6 = arith.constant 4.800000e+01 : f32
    %6 = vector.broadcast %cst_6 : f32 to vector<32x1xf32>
    %7 = arith.divf %5, %6 : vector<32x1xf32>
    %8 = vector.broadcast %7 : vector<32x1xf32> to vector<32x48xf32>
    %9 = arith.subf %1, %8 : vector<32x48xf32>
    %10 = arith.mulf %9, %9 : vector<32x48xf32>
    %cst_7 = arith.constant dense<0.000000e+00> : vector<32xf32>
    %11 = vector.multi_reduction <add>, %10, %cst_7 [1] : vector<32x48xf32> to vector<32xf32>
    %12 = vector.shape_cast %11 : vector<32xf32> to vector<32x1xf32>
    %cst_8 = arith.constant 4.800000e+01 : f32
    %13 = vector.broadcast %cst_8 : f32 to vector<32x1xf32>
    %14 = arith.divf %12, %13 : vector<32x1xf32>
    %15 = vector.broadcast %7 : vector<32x1xf32> to vector<32x48xf32>
    %16 = arith.subf %1, %15 : vector<32x48xf32>
    %cst_9 = arith.constant 9.99999974E-6 : f32
    %17 = vector.broadcast %cst_9 : f32 to vector<32x1xf32>
    %18 = arith.addf %14, %17 : vector<32x1xf32>
    %19 = math.rsqrt %18 : vector<32x1xf32>
    %20 = vector.broadcast %19 : vector<32x1xf32> to vector<32x48xf32>
    %21 = arith.mulf %16, %20 : vector<32x48xf32>
    %22 = vector.broadcast %2 : vector<1x48xf32> to vector<32x48xf32>
    %23 = arith.mulf %21, %22 : vector<32x48xf32>
    %24 = vector.broadcast %3 : vector<1x48xf32> to vector<32x48xf32>
    %25 = arith.addf %23, %24 : vector<32x48xf32>
    %c0_10 = arith.constant 0 : index
    %c0_11 = arith.constant 0 : index
    %26 = vector.load %arg6[%c0_10, %c0_11] : memref<48x32xf32, #tpu.memory_space<vmem>>, vector<48x32xf32>
    %cst_12 = arith.constant dense<0.000000e+00> : vector<32x32xf32>
    %27 = tpu.matmul %25, %26, %cst_12 {dimension_numbers = #tpu.dot_dimension_numbers<[1], [0], [0], [1], [0, 0, 1, 1], [], []>} : vector<32x48xf32>, vector<48x32xf32>, vector<32x32xf32> -> vector<32x32xf32>
    %c0_13 = arith.constant 0 : index
    %c0_14 = arith.constant 0 : index
    %28 = vector.load %arg7[%c0_13, %c0_14] : memref<1x32xf32, #tpu.memory_space<vmem>>, vector<1x32xf32>
    %29 = vector.broadcast %28 : vector<1x32xf32> to vector<32x32xf32>
    %30 = arith.addf %27, %29 : vector<32x32xf32>
    %c0_15 = arith.constant 0 : index
    %c0_16 = arith.constant 0 : index
    %31 = vector.load %arg8[%c0_15, %c0_16] : memref<1x32xf32, #tpu.memory_space<vmem>>, vector<1x32xf32>
    %c0_17 = arith.constant 0 : index
    %c0_18 = arith.constant 0 : index
    %32 = vector.load %arg9[%c0_17, %c0_18] : memref<1x32xf32, #tpu.memory_space<vmem>>, vector<1x32xf32>
    %cst_19 = arith.constant dense<0.000000e+00> : vector<32xf32>
    %33 = vector.multi_reduction <add>, %30, %cst_19 [1] : vector<32x32xf32> to vector<32xf32>
    %34 = vector.shape_cast %33 : vector<32xf32> to vector<32x1xf32>
    %cst_20 = arith.constant 3.200000e+01 : f32
    %35 = vector.broadcast %cst_20 : f32 to vector<32x1xf32>
    %36 = arith.divf %34, %35 : vector<32x1xf32>
    %37 = vector.broadcast %36 : vector<32x1xf32> to vector<32x32xf32>
    %38 = arith.subf %30, %37 : vector<32x32xf32>
    %39 = arith.mulf %38, %38 : vector<32x32xf32>
    %cst_21 = arith.constant dense<0.000000e+00> : vector<32xf32>
    %40 = vector.multi_reduction <add>, %39, %cst_21 [1] : vector<32x32xf32> to vector<32xf32>
    %41 = vector.shape_cast %40 : vector<32xf32> to vector<32x1xf32>
    %cst_22 = arith.constant 3.200000e+01 : f32
    %42 = vector.broadcast %cst_22 : f32 to vector<32x1xf32>
    %43 = arith.divf %41, %42 : vector<32x1xf32>
    %44 = vector.broadcast %36 : vector<32x1xf32> to vector<32x32xf32>
    %45 = arith.subf %30, %44 : vector<32x32xf32>
    %cst_23 = arith.constant 9.99999974E-6 : f32
    %46 = vector.broadcast %cst_23 : f32 to vector<32x1xf32>
    %47 = arith.addf %43, %46 : vector<32x1xf32>
    %48 = math.rsqrt %47 : vector<32x1xf32>
    %49 = vector.broadcast %48 : vector<32x1xf32> to vector<32x32xf32>
    %50 = arith.mulf %45, %49 : vector<32x32xf32>
    %51 = vector.broadcast %31 : vector<1x32xf32> to vector<32x32xf32>
    %52 = arith.mulf %50, %51 : vector<32x32xf32>
    %53 = vector.broadcast %32 : vector<1x32xf32> to vector<32x32xf32>
    %54 = arith.addf %52, %53 : vector<32x32xf32>
    %55 = vector.shape_cast %54 : vector<32x32xf32> to vector<2x16x32xf32>
    %c0_24 = arith.constant 0 : index
    %c0_25 = arith.constant 0 : index
    %c0_26 = arith.constant 0 : index
    %56 = vector.load %arg2[%c0_24, %c0_25, %c0_26] : memref<1x1x32xf32, #tpu.memory_space<vmem>>, vector<1x1x32xf32>
    %c0_27 = arith.constant 0 : index
    %c0_28 = arith.constant 0 : index
    %c0_29 = arith.constant 0 : index
    %57 = vector.load %arg3[%c0_27, %c0_28, %c0_29] : memref<1x17x32xf32, #tpu.memory_space<vmem>>, vector<1x1x32xf32>
    %58 = arith.addf %56, %57 : vector<1x1x32xf32>
    %59 = vector.shape_cast %58 : vector<1x1x32xf32> to vector<1x1x32xf32>
    %60 = vector.broadcast %59 : vector<1x1x32xf32> to vector<2x1x32xf32>
    %c0_30 = arith.constant 0 : index
    %c0_31 = arith.constant 0 : index
    %c0_32 = arith.constant 0 : index
    %61 = vector.load %arg10[%c0_30, %c0_31, %c0_32] : memref<2x17x32xf32, #tpu.memory_space<vmem>>, vector<2x1x32xf32>
    tpu.vector_store %arg10[%c0_30, %c0_31, %c0_32], %60 {strides = array<i32>} : memref<2x17x32xf32, #tpu.memory_space<vmem>>, vector<2x1x32xf32>,
    %c0_33 = arith.constant 0 : index
    %c1 = arith.constant 1 : index
    %c0_34 = arith.constant 0 : index
    %62 = vector.load %arg3[%c0_33, %c1, %c0_34] : memref<1x17x32xf32, #tpu.memory_space<vmem>>, vector<1x16x32xf32>
    %63 = vector.broadcast %62 : vector<1x16x32xf32> to vector<2x16x32xf32>
    %64 = arith.addf %55, %63 : vector<2x16x32xf32>
    %c0_35 = arith.constant 0 : index
    %c1_36 = arith.constant 1 : index
    %c0_37 = arith.constant 0 : index
    %65 = vector.load %arg10[%c0_35, %c1_36, %c0_37] : memref<2x17x32xf32, #tpu.memory_space<vmem>>, vector<2x16x32xf32>
    tpu.vector_store %arg10[%c0_35, %c1_36, %c0_37], %64 {strides = array<i32>} : memref<2x17x32xf32, #tpu.memory_space<vmem>>, vector<2x16x32xf32>,
    return
  }
  func.func @transform_0(%arg0: i32) -> (i32, i32, i32) {
    %c0_i32 = arith.constant 0 : i32
    %c0_i32_0 = arith.constant 0 : i32
    %c0_i32_1 = arith.constant 0 : i32
    return %arg0, %c0_i32, %c0_i32_0 : i32, i32, i32
  }
  func.func @transform_1(%arg0: i32) -> (i32, i32, i32) {
    %c0_i32 = arith.constant 0 : i32
    %c0_i32_0 = arith.constant 0 : i32
    %c0_i32_1 = arith.constant 0 : i32
    %c0_i32_2 = arith.constant 0 : i32
    return %c0_i32, %c0_i32_0, %c0_i32_1 : i32, i32, i32
  }
  func.func @transform_2(%arg0: i32) -> (i32, i32, i32) {
    %c0_i32 = arith.constant 0 : i32
    %c0_i32_0 = arith.constant 0 : i32
    %c0_i32_1 = arith.constant 0 : i32
    %c0_i32_2 = arith.constant 0 : i32
    return %c0_i32, %c0_i32_0, %c0_i32_1 : i32, i32, i32
  }
  func.func @transform_3(%arg0: i32) -> (i32, i32) {
    %c0_i32 = arith.constant 0 : i32
    %c0_i32_0 = arith.constant 0 : i32
    %c0_i32_1 = arith.constant 0 : i32
    return %c0_i32, %c0_i32_0 : i32, i32
  }
  func.func @transform_4(%arg0: i32) -> (i32, i32) {
    %c0_i32 = arith.constant 0 : i32
    %c0_i32_0 = arith.constant 0 : i32
    %c0_i32_1 = arith.constant 0 : i32
    return %c0_i32, %c0_i32_0 : i32, i32
  }
  func.func @transform_5(%arg0: i32) -> (i32, i32) {
    %c0_i32 = arith.constant 0 : i32
    %c0_i32_0 = arith.constant 0 : i32
    %c0_i32_1 = arith.constant 0 : i32
    return %c0_i32, %c0_i32_0 : i32, i32
  }
  func.func @transform_6(%arg0: i32) -> (i32, i32) {
    %c0_i32 = arith.constant 0 : i32
    %c0_i32_0 = arith.constant 0 : i32
    %c0_i32_1 = arith.constant 0 : i32
    return %c0_i32, %c0_i32_0 : i32, i32
  }
  func.func @transform_7(%arg0: i32) -> (i32, i32) {
    %c0_i32 = arith.constant 0 : i32
    %c0_i32_0 = arith.constant 0 : i32
    %c0_i32_1 = arith.constant 0 : i32
    return %c0_i32, %c0_i32_0 : i32, i32
  }
  func.func @transform_8(%arg0: i32) -> (i32, i32) {
    %c0_i32 = arith.constant 0 : i32
    %c0_i32_0 = arith.constant 0 : i32
    %c0_i32_1 = arith.constant 0 : i32
    return %c0_i32, %c0_i32_0 : i32, i32
  }
  func.func @transform_9(%arg0: i32) -> (i32, i32, i32) {
    %c0_i32 = arith.constant 0 : i32
    %c0_i32_0 = arith.constant 0 : i32
    %c0_i32_1 = arith.constant 0 : i32
    return %arg0, %c0_i32, %c0_i32_0 : i32, i32, i32
  }
}

</mosaic_0001>

<bundles_post_ra>
// kernel: tpu_custom_call.1
= control target key start
LH: loop header
LB: loop body
LE: loop exit
PB: predicated region body
PF: predicated region fallthrough
CT: control target
= control target key end

     0   :  { %vm38_vm0 = vcmask 392192   ;;  %v380_v8 = vmov 48.0   ;;  %vm201_vm14 = vcmask 261120   ;;  %vm314_vm15 = vcmask 253952   ;;  %s576_s0 = inlined_call_operand.vmem [shape: f32[2,16,48], index: 0, kind: input, shape index: {}]   ;;  %s577_s3 = inlined_call_operand.vmem [shape: f32[1,48], index: 3, kind: input, shape index: {}]   ;;  %s578_s4 = inlined_call_operand.vmem [shape: f32[1,48], index: 4, kind: input, shape index: {}]   ;;  %s579_s6 = inlined_call_operand.vmem [shape: f32[1,32], index: 6, kind: input, shape index: {}]   ;;  %s580_s5 = inlined_call_operand.vmem [shape: f32[48,32], index: 5, kind: input, shape index: {}]   ;;  %s581_s7 = inlined_call_operand.vmem [shape: f32[1,32], index: 7, kind: input, shape index: {}]   ;;  %s582_s8 = inlined_call_operand.vmem [shape: f32[1,32], index: 8, kind: input, shape index: {}]   ;;  %s583_s1 = inlined_call_operand.vmem [shape: f32[1,1,32], index: 1, kind: input, shape index: {}]   ;;  %s584_s2 = inlined_call_operand.vmem [shape: f32[1,17,32], index: 2, kind: input, shape index: {}]   ;;  %s585_s9 = inlined_call_operand.vmem [shape: f32[2,17,32], index: 9, kind: output, shape index: {}]  }
   0x1   :  { %v34_v0 = vld [vmem:[%s576_s0 + $0x10] sm:$0xff]  ;;  %v32_v1 = vld [vmem:[%s576_s0] sm:$0xff]  ;;  %v35_v4 = vld [vmem:[%s576_s0 + $0x18] sm:$0xff]  ;;  %360 = vrcp.f32 %v380_v8 }
   0x2   :  { %v45_v2 = vsel %vm38_vm0, %v34_v0, 0.0  ;;  %v39_v3 = vsel %vm38_vm0, %v32_v1, 0.0  ;;  %v33_v5 = vld [vmem:[%s576_s0 + $0x8] sm:$0xff]  ;;  %v48_v6 = vsel %vm38_vm0, %v35_v4, 0.0  ;;  %v152_v36 = vld [vmem:[%s580_s5 + $0x20] sm:$0xff]  ;;  %v151_v37 = vld [vmem:[%s580_s5 + $0x18] sm:$0xff] }
   0x3   :  { %46 = vadd.xlane.f32.xlu0 %v45_v2  ;;  %40 = vadd.xlane.f32.xlu1 %v39_v3  ;;  %v42_v7 = vsel %vm38_vm0, %v33_v5, 0.0  ;;  %v153_v35 = vld [vmem:[%s580_s5 + $0x28] sm:$0xff]  ;;  %v150_v38 = vld [vmem:[%s580_s5 + $0x10] sm:$0xff]  ;;  %v148_v40 = vld [vmem:[%s580_s5] sm:$0xff] }
   0x4   :  { %180 = vmatpush.msra.mxu0 %v153_v35  ;;  %336 = vmatpush.msra.mxu2 %v153_v35  ;;  %v149_v39 = vld [vmem:[%s580_s5 + $0x8] sm:$0xff] }
   0x5   :  { %335 = vmatpush.msra.mxu1 %v153_v35  ;;  %337 = vmatpush.msra.mxu3 %v153_v35 }
   0x6   :  { %181 = vmatpush.msra.mxu0 %v152_v36  ;;  %339 = vmatpush.msra.mxu2 %v152_v36 }
   0x7   :  { %v361_v9 = vpop.eup %360  ;;  %338 = vmatpush.msra.mxu1 %v152_v36  ;;  %340 = vmatpush.msra.mxu3 %v152_v36 }
   0x8   :  { %v52_v10 = vmul.f32 48.0, %v361_v9  ;;  %vm56_vm1 = vweird.f32 %v361_v9  ;;  %182 = vmatpush.msra.mxu0 %v151_v37  ;;  %342 = vmatpush.msra.mxu2 %v151_v37 }
   0x9   :  { %341 = vmatpush.msra.mxu1 %v151_v37  ;;  %343 = vmatpush.msra.mxu3 %v151_v37 }
   0xa   :  { %v53_v11 = vsub.f32 1.0, %v52_v10  ;;  %183 = vmatpush.msra.mxu0 %v150_v38  ;;  %345 = vmatpush.msra.mxu2 %v150_v38  ;;  %v356_v10 = vld [vmem:[%s578_s4] ss:$0 sm:$0xff] }
   0xb   :  { %49 = vadd.xlane.f32.xlu0 %v48_v6  ;;  %43 = vadd.xlane.f32.xlu1 %v42_v7 }
   0xc   :  { %v54_v12 = vmul.f32 %v361_v9, %v53_v11  ;;  %344 = vmatpush.msra.mxu1 %v150_v38  ;;  %346 = vmatpush.msra.mxu3 %v150_v38 }
   0xd   :  { %184 = vmatpush.msra.mxu0 %v149_v39  ;;  %348 = vmatpush.msra.mxu2 %v149_v39 }
   0xe   :  { %v55_v13 = vadd.f32 %v361_v9, %v54_v12  ;;  %347 = vmatpush.msra.mxu1 %v149_v39  ;;  %349 = vmatpush.msra.mxu3 %v149_v39 }
   0xf   :  { %185 = vmatpush.msra.mxu0 %v148_v40  ;;  %351 = vmatpush.msra.mxu2 %v148_v40 }
  0x10   :  { %v448_v14 = vsel %vm56_vm1, %v361_v9, %v55_v13  ;;  %350 = vmatpush.msra.mxu1 %v148_v40  ;;  %352 = vmatpush.msra.mxu3 %v148_v40 }
  0x76   :  { %v47_v15 = vpop.xlane.xlu0 %46  ;;  %v41_v16 = vpop.xlane.xlu1 %40 }
  0x77   :  { %v60_v17 = vmul.f32 %v448_v14, %v47_v15  ;;  %v58_v18 = vmul.f32 %v448_v14, %v41_v16 }
  0x79   :  { %v452_v19 = vsub.f32 %v34_v0, %v60_v17  ;;  %v454_v20 = vsub.f32 %v32_v1, %v58_v18 }
  0x7b   :  { %v68_v21 = vmul.f32 %v452_v19, %v452_v19  ;;  %v66_v22 = vmul.f32 %v454_v20, %v454_v20 }
  0x7d   :  { %v76_v23 = vsel %vm38_vm0, %v68_v21, 0.0  ;;  %v70_v24 = vsel %vm38_vm0, %v66_v22, 0.0 }
  0x7e   :  { %77 = vadd.xlane.f32.xlu2 %v76_v23  ;;  %v50_v25 = vpop.xlane.xlu0 %49  ;;  %71 = vadd.xlane.f32.xlu0 %v70_v24  ;;  %v44_v26 = vpop.xlane.xlu1 %43 }
  0x7f   :  { %v61_v27 = vmul.f32 %v448_v14, %v50_v25  ;;  %v59_v28 = vmul.f32 %v448_v14, %v44_v26 }
  0x81   :  { %v464_v29 = vsub.f32 %v35_v4, %v61_v27  ;;  %v466_v30 = vsub.f32 %v33_v5, %v59_v28  ;;  %v355_v5 = vld [vmem:[%s577_s3] ss:$0 sm:$0xff] }
  0x83   :  { %v69_v31 = vmul.f32 %v464_v29, %v464_v29  ;;  %v67_v32 = vmul.f32 %v466_v30, %v466_v30 }
  0x85   :  { %v79_v33 = vsel %vm38_vm0, %v69_v31, 0.0  ;;  %v73_v34 = vsel %vm38_vm0, %v67_v32, 0.0 }
  0x86   :  { %80 = vadd.xlane.f32.xlu2 %v79_v33  ;;  %74 = vadd.xlane.f32.xlu1 %v73_v34  ;;  %v357_v33 = vld [vmem:[%s579_s6] ss:$0 sm:$0xff] }
  0xf1   :  { %v78_v41 = vpop.xlane.xlu2 %77  ;;  %v72_v42 = vpop.xlane.xlu0 %71 }
  0xf2   :  { %v84_v43 = vmul.f32 %v78_v41, %v448_v14  ;;  %v82_v44 = vmul.f32 %v72_v42, %v448_v14 }
  0xf4   :  { %v88_v45 = vadd.f32 1e-05, %v84_v43  ;;  %v86_v46 = vadd.f32 1e-05, %v82_v44  ;;  %v381_v44 = vmov 32.0  }
  0xf6   :  { %362 = vrsqrt.f32 %v88_v45  ;;  %vm96_vm3 = vweird.f32 %v86_v46  ;;  %vm116_vm5 = vweird.f32 %v88_v45 }
  0xf7   :  { %364 = vrsqrt.f32 %v86_v46 }
  0xf9   :  { %v81_v47 = vpop.xlane.xlu2 %80  ;;  %v75_v48 = vpop.xlane.xlu1 %74 }
  0xfa   :  { %v85_v49 = vmul.f32 %v81_v47, %v448_v14  ;;  %v83_v50 = vmul.f32 %v75_v48, %v448_v14  ;;  %v311_v48 = vld [vmem:[%s583_s1] sm:$0x1] }
  0xfc   :  { %v363_v51 = vpop.eup %362  ;;  %v89_v52 = vadd.f32 1e-05, %v85_v49  ;;  %v87_v53 = vadd.f32 1e-05, %v83_v50  ;;  %v312_v50 = vld [vmem:[%s584_s2] sm:$0x1] }
  0xfd   :  { %v365_v54 = vpop.eup %364  ;;  %v111_v55 = vmul.f32 %v363_v51, %v88_v45  ;;  %vm117_vm2 = vweird.f32 %v363_v51 }
  0xfe   :  { %v91_v56 = vmul.f32 %v365_v54, %v86_v46  ;;  %366 = vrsqrt.f32 %v89_v52  ;;  %vm97_vm4 = vweird.f32 %v365_v54  ;;  %vm118_vm6 = vmor %vm116_vm5, %vm117_vm2  ;;  %vm106_vm9 = vweird.f32 %v87_v53 }
  0xff   :  { %v112_v57 = vmul.f32 %v363_v51, %v111_v55  ;;  %368 = vrsqrt.f32 %v87_v53  ;;  %vm98_vm7 = vmor %vm96_vm3, %vm97_vm4  ;;  %vm126_vm11 = vweird.f32 %v89_v52 }
 0x100   :  { %v92_v58 = vmul.f32 %v365_v54, %v91_v56  ;;  %370 = vrcp.f32 %v381_v44 }
 0x101   :  { %v113_v59 = vmul.f32 0.5, %v112_v57 }
 0x102   :  { %v93_v60 = vmul.f32 0.5, %v92_v58 }
 0x103   :  { %v114_v61 = vsub.f32 1.5, %v113_v59 }
 0x104   :  { %v367_v62 = vpop.eup %366  ;;  %v94_v63 = vsub.f32 1.5, %v93_v60 }
 0x105   :  { %v369_v0 = vpop.eup %368  ;;  %v115_v1 = vmul.f32 %v363_v51, %v114_v61  ;;  %v121_v2 = vmul.f32 %v367_v62, %v89_v52  ;;  %vm127_vm8 = vweird.f32 %v367_v62 }
 0x106   :  { %v95_v3 = vmul.f32 %v365_v54, %v94_v63  ;;  %v101_v4 = vmul.f32 %v369_v0, %v87_v53  ;;  %vm107_vm10 = vweird.f32 %v369_v0  ;;  %vm128_vm12 = vmor %vm126_vm11, %vm127_vm8  ;;  %v371_v45 = vpop.eup %370 }
 0x107   :  { %v119_v6 = vsel %vm118_vm6, %v363_v51, %v115_v1  ;;  %v122_v7 = vmul.f32 %v367_v62, %v121_v2  ;;  %vm108_vm13 = vmor %vm106_vm9, %vm107_vm10  ;;  %v215_v46 = vmul.f32 32.0, %v371_v45  ;;  %v313_v51 = vadd.f32 %v312_v50, %v311_v48 }
 0x108   :  { %v99_v8 = vsel %vm98_vm7, %v365_v54, %v95_v3  ;;  %v102_v9 = vmul.f32 %v369_v0, %v101_v4  ;;  %v132_v11 = vmul.f32 %v119_v6, %v452_v19 }
 0x109   :  { %v123_v12 = vmul.f32 0.5, %v122_v7  ;;  %v130_v13 = vmul.f32 %v99_v8, %v454_v20  ;;  %v216_v47 = vsub.f32 1.0, %v215_v46  ;;  %315 = vst.msk [vmem:[%s585_s9] sm:$0x1] %vm314_vm15, %v313_v51 }
 0x10a   :  { %v103_v14 = vmul.f32 0.5, %v102_v9  ;;  %v139_v15 = vmul.f32 %v355_v5, %v132_v11  ;;  %316 = vst.msk [vmem:[%s585_s9 + $0x18] sm:$0x1] %vm314_vm15, %v313_v51 }
 0x10b   :  { %v124_v16 = vsub.f32 1.5, %v123_v12  ;;  %v137_v17 = vmul.f32 %v355_v5, %v130_v13  ;;  %v217_v49 = vmul.f32 %v371_v45, %v216_v47 }
 0x10c   :  { %v104_v18 = vsub.f32 1.5, %v103_v14  ;;  %v146_v21 = vadd.f32 %v356_v10, %v139_v15 }
 0x10d   :  { %v125_v22 = vmul.f32 %v367_v62, %v124_v16  ;;  %v144_v23 = vadd.f32 %v356_v10, %v137_v17  ;;  %v218_v52 = vadd.f32 %v371_v45, %v217_v49 }
 0x10e   :  { %v105_v24 = vmul.f32 %v369_v0, %v104_v18  ;;  %333 = vmatmul.msk.f32.vlgmr.msra.gmra.mxu2 %vm38_vm0, %v146_v21 }
 0x10f   :  { %v129_v19 = vsel %vm128_vm12, %v367_v62, %v125_v22  ;;  %331 = vmatmul.msk.f32.vlgmr.msra.gmra.mxu0 %vm38_vm0, %v144_v23 }
 0x110   :  { %v109_v20 = vsel %vm108_vm13, %v369_v0, %v105_v24  ;;  %v133_v25 = vmul.f32 %v129_v19, %v464_v29 }
 0x111   :  { %v131_v26 = vmul.f32 %v109_v20, %v466_v30 }
 0x112   :  { %v140_v27 = vmul.f32 %v355_v5, %v133_v25 }
 0x113   :  { %v138_v28 = vmul.f32 %v355_v5, %v131_v26 }
 0x114   :  { %v147_v31 = vadd.f32 %v356_v10, %v140_v27 }
 0x115   :  { %v145_v32 = vadd.f32 %v356_v10, %v138_v28 }
 0x116   :  { %334 = vmatmul.msk.f32.vlgmr.msra.gmra.mxu3 %vm38_vm0, %v147_v31 }
 0x117   :  { %332 = vmatmul.msk.f32.vlgmr.msra.gmra.mxu1 %vm38_vm0, %v145_v32  ;;  %vm219_vm0 = vweird.f32 %v371_v45 }
 0x118   :  { %v220_v53 = vsel %vm219_vm0, %v371_v45, %v218_v52  ;;  %v317_v45 = vld [vmem:[%s584_s2 + $0x1] sm:$0xff] }
 0x18c   :  { %v187_v34 = vpop.f32.mrf.mxu0 }
 0x18d   :  { %v188_v35 = vadd.f32 %v357_v33, %v187_v34 }
 0x18f   :  { %v202_v36 = vsel %vm201_vm14, %v188_v35, 0.0 }
 0x190   :  { %203 = vadd.xlane.f32.xlu2 %v202_v36 }
 0x191   :  { %v193_v29 = vpop.f32.mrf.mxu2 }
 0x192   :  { %v194_v30 = vadd.f32 %v357_v33, %v193_v29 }
 0x194   :  { %v190_v37 = vpop.f32.mrf.mxu1  ;;  %v208_v38 = vsel %vm201_vm14, %v194_v30, 0.0 }
 0x195   :  { %v191_v39 = vadd.f32 %v357_v33, %v190_v37  ;;  %209 = vadd.xlane.f32.xlu1 %v208_v38  ;;  %v359_v37 = vld [vmem:[%s582_s8] ss:$0 sm:$0xff] }
 0x197   :  { %v205_v40 = vsel %vm201_vm14, %v191_v39, 0.0 }
 0x198   :  { %206 = vadd.xlane.f32.xlu0 %v205_v40 }
 0x199   :  { %v196_v41 = vpop.f32.mrf.mxu3 }
 0x19a   :  { %v197_v42 = vadd.f32 %v357_v33, %v196_v41 }
 0x19c   :  { %v211_v43 = vsel %vm201_vm14, %v197_v42, 0.0 }
 0x19d   :  { %212 = vadd.xlane.f32.xlu2 %v211_v43 }
 0x203   :  { %v204_v54 = vpop.xlane.xlu2 %203 }
 0x204   :  { %v221_v55 = vmul.f32 %v220_v53, %v204_v54 }
 0x206   :  { %v225_v56 = vsub.f32 %v188_v35, %v221_v55  ;;  %v358_v35 = vld [vmem:[%s581_s7] ss:$0 sm:$0xff] }
 0x208   :  { %v210_v57 = vpop.xlane.xlu1 %209  ;;  %v229_v58 = vmul.f32 %v225_v56, %v225_v56 }
 0x209   :  { %v223_v59 = vmul.f32 %v220_v53, %v210_v57 }
 0x20a   :  { %v233_v60 = vsel %vm201_vm14, %v229_v58, 0.0 }
 0x20b   :  { %v530_v61 = vsub.f32 %v194_v30, %v223_v59  ;;  %234 = vadd.xlane.f32.xlu0 %v233_v60  ;;  %v207_v62 = vpop.xlane.xlu0 %206 }
 0x20c   :  { %v222_v63 = vmul.f32 %v220_v53, %v207_v62  ;;  %v318_v62 = vld [vmem:[%s584_s2 + $0x9] sm:$0xff] }
 0x20d   :  { %v231_v0 = vmul.f32 %v530_v61, %v530_v61 }
 0x20e   :  { %v534_v1 = vsub.f32 %v191_v39, %v222_v63 }
 0x20f   :  { %v239_v2 = vsel %vm201_vm14, %v231_v0, 0.0 }
 0x210   :  { %v213_v3 = vpop.xlane.xlu2 %212  ;;  %240 = vadd.xlane.f32.xlu2 %v239_v2  ;;  %v230_v4 = vmul.f32 %v534_v1, %v534_v1 }
 0x211   :  { %v224_v5 = vmul.f32 %v220_v53, %v213_v3 }
 0x212   :  { %v236_v6 = vsel %vm201_vm14, %v230_v4, 0.0 }
 0x213   :  { %v540_v7 = vsub.f32 %v197_v42, %v224_v5  ;;  %237 = vadd.xlane.f32.xlu1 %v236_v6 }
 0x215   :  { %v232_v8 = vmul.f32 %v540_v7, %v540_v7 }
 0x217   :  { %v242_v9 = vsel %vm201_vm14, %v232_v8, 0.0 }
 0x218   :  { %243 = vadd.xlane.f32.xlu0 %v242_v9 }
 0x27e   :  { %v235_v10 = vpop.xlane.xlu0 %234 }
 0x27f   :  { %v245_v11 = vmul.f32 %v235_v10, %v220_v53 }
 0x281   :  { %v249_v12 = vadd.f32 1e-05, %v245_v11 }
 0x283   :  { %372 = vrsqrt.f32 %v249_v12  ;;  %v241_v13 = vpop.xlane.xlu2 %240  ;;  %vm259_vm2 = vweird.f32 %v249_v12 }
 0x284   :  { %v247_v14 = vmul.f32 %v241_v13, %v220_v53 }
 0x286   :  { %v251_v15 = vadd.f32 1e-05, %v247_v14  ;;  %v238_v16 = vpop.xlane.xlu1 %237 }
 0x287   :  { %v246_v17 = vmul.f32 %v238_v16, %v220_v53 }
 0x288   :  { %374 = vrsqrt.f32 %v251_v15  ;;  %vm279_vm5 = vweird.f32 %v251_v15 }
 0x289   :  { %v373_v18 = vpop.eup %372  ;;  %v250_v21 = vadd.f32 1e-05, %v246_v17 }
 0x28a   :  { %v254_v22 = vmul.f32 %v373_v18, %v249_v12  ;;  %vm260_vm1 = vweird.f32 %v373_v18 }
 0x28b   :  { %376 = vrsqrt.f32 %v250_v21  ;;  %v244_v23 = vpop.xlane.xlu0 %243  ;;  %vm261_vm3 = vmor %vm259_vm2, %vm260_vm1  ;;  %vm269_vm8 = vweird.f32 %v250_v21 }
 0x28c   :  { %v255_v24 = vmul.f32 %v373_v18, %v254_v22  ;;  %v248_v19 = vmul.f32 %v244_v23, %v220_v53 }
 0x28e   :  { %v375_v20 = vpop.eup %374  ;;  %v256_v25 = vmul.f32 0.5, %v255_v24  ;;  %v252_v26 = vadd.f32 1e-05, %v248_v19 }
 0x28f   :  { %v274_v27 = vmul.f32 %v375_v20, %v251_v15  ;;  %vm280_vm4 = vweird.f32 %v375_v20 }
 0x290   :  { %v257_v28 = vsub.f32 1.5, %v256_v25  ;;  %378 = vrsqrt.f32 %v252_v26  ;;  %vm281_vm6 = vmor %vm279_vm5, %vm280_vm4  ;;  %vm289_vm11 = vweird.f32 %v252_v26 }
 0x291   :  { %v377_v31 = vpop.eup %376  ;;  %v275_v32 = vmul.f32 %v375_v20, %v274_v27 }
 0x292   :  { %v258_v33 = vmul.f32 %v373_v18, %v257_v28  ;;  %v264_v34 = vmul.f32 %v377_v31, %v250_v21  ;;  %vm270_vm7 = vweird.f32 %v377_v31 }
 0x293   :  { %v276_v36 = vmul.f32 0.5, %v275_v32  ;;  %vm271_vm9 = vmor %vm269_vm8, %vm270_vm7 }
 0x294   :  { %v262_v29 = vsel %vm261_vm3, %v373_v18, %v258_v33  ;;  %v265_v30 = vmul.f32 %v377_v31, %v264_v34 }
 0x295   :  { %v293_v38 = vmul.f32 %v262_v29, %v225_v56  ;;  %v277_v39 = vsub.f32 1.5, %v276_v36 }
 0x296   :  { %v379_v40 = vpop.eup %378  ;;  %v266_v41 = vmul.f32 0.5, %v265_v30 }
 0x297   :  { %v300_v42 = vmul.f32 %v358_v35, %v293_v38  ;;  %v278_v43 = vmul.f32 %v375_v20, %v277_v39  ;;  %v284_v44 = vmul.f32 %v379_v40, %v252_v26  ;;  %vm290_vm10 = vweird.f32 %v379_v40 }
 0x298   :  { %v267_v46 = vsub.f32 1.5, %v266_v41  ;;  %vm291_vm12 = vmor %vm289_vm11, %vm290_vm10 }
 0x299   :  { %v307_v47 = vadd.f32 %v359_v37, %v300_v42  ;;  %v282_v48 = vsel %vm281_vm6, %v375_v20, %v278_v43  ;;  %v285_v49 = vmul.f32 %v379_v40, %v284_v44 }
 0x29a   :  { %v295_v50 = vmul.f32 %v282_v48, %v530_v61  ;;  %v268_v51 = vmul.f32 %v377_v31, %v267_v46 }
 0x29b   :  { %v319_v52 = vadd.f32 %v317_v45, %v307_v47  ;;  %v286_v53 = vmul.f32 0.5, %v285_v49 }
 0x29c   :  { %v302_v54 = vmul.f32 %v358_v35, %v295_v50  ;;  %v272_v55 = vsel %vm271_vm9, %v377_v31, %v268_v51 }
 0x29d   :  { %323 = vst.msk [vmem:[%s585_s9 + $0x1] sm:$0xff] %vm201_vm14, %v319_v52  ;;  %v294_v56 = vmul.f32 %v272_v55, %v534_v1  ;;  %v287_v57 = vsub.f32 1.5, %v286_v53 }
 0x29e   :  { %v309_v58 = vadd.f32 %v359_v37, %v302_v54 }
 0x29f   :  { %v301_v59 = vmul.f32 %v358_v35, %v294_v56  ;;  %v288_v60 = vmul.f32 %v379_v40, %v287_v57 }
 0x2a0   :  { %v321_v61 = vadd.f32 %v317_v45, %v309_v58 }
 0x2a1   :  { %v308_v63 = vadd.f32 %v359_v37, %v301_v59  ;;  %v292_v0 = vsel %vm291_vm12, %v379_v40, %v288_v60 }
 0x2a2   :  { %325 = vst.msk [vmem:[%s585_s9 + $0x19] sm:$0xff] %vm201_vm14, %v321_v61  ;;  %v296_v1 = vmul.f32 %v292_v0, %v540_v7 }
 0x2a3   :  { %v320_v2 = vadd.f32 %v318_v62, %v308_v63 }
 0x2a4   :  { %v303_v3 = vmul.f32 %v358_v35, %v296_v1 }
 0x2a5   :  { %324 = vst.msk [vmem:[%s585_s9 + $0x9] sm:$0xff] %vm201_vm14, %v320_v2 }
 0x2a6   :  { %v310_v4 = vadd.f32 %v359_v37, %v303_v3 }
 0x2a8   :  { %v322_v5 = vadd.f32 %v318_v62, %v310_v4 }
 0x2aa   :  { %326 = vst.msk [vmem:[%s585_s9 + $0x21] sm:$0xff] %vm201_vm14, %v322_v5 }

</bundles_post_ra>
